<compile_context>
chip_gen: v6e
topology: v6e:2x2x1
jax: 0.10.0
libtpu: 0.0.40
codegen_flags: <defaults>
</compile_context>

<pallas_src>
import jax
import jax.numpy as jnp
from jax.experimental import pallas as pl
from jax.experimental.pallas import tpu as pltpu

LANE = 128


def _round_up(x, m):
    return ((x + m - 1) // m) * m


# ----------------------------------------------------------------------------
# Pallas kernel: out_tile = (template_tile + coeff_aug @ basis_tile) * scale_tile
#   (translation is already folded into coeff_aug / basis rows)
# ----------------------------------------------------------------------------
def _fused_blend_kernel(coeff_ref, basis_ref, template_ref, scale_ref, out_ref):
    # coeff_ref:    (Bp, Kp) f32 VMEM  coeffs + trans, block-diag over models,
    #                                  resident across the N grid (index (0,0))
    # basis_ref:    (Kp, TN) bf16 VMEM block-diagonal fused basis tile
    # template_ref: (1,  TN) f32 VMEM  fused flattened template tile
    # scale_ref:    (1,  TN) f32 VMEM  per-column |scale| (one value per model)
    # out_ref:      (Bp, TN) f32 VMEM
    acc = jnp.dot(coeff_ref[...],
                  basis_ref[...].astype(jnp.float32),   # bf16 in HBM, f32 MXU acc
                  preferred_element_type=jnp.float32)
    out_ref[...] = (template_ref[...] + acc) * scale_ref[...]


# ----------------------------------------------------------------------------
# Host-side model construction (static, done once)
# ----------------------------------------------------------------------------
def build_block_diag_model(groups_in, *, tn=512, k_align=16,
                           basis_dtype=jnp.bfloat16):
    """groups_in: list of (bases_list, templates_list) per statistical model.
    Builds a single block-diagonal basis with 3 translation rows per model
    (tiled 3x3 identity) and TPU-friendly padding. Returns arrays + bookkeeping.
    """
    assert tn % LANE == 0
    groups, blocks = [], []
    k_off, n_off = 0, 0
    for bases, templates in groups_in:
        K = bases[0].shape[0]
        for b in bases:
            assert b.shape[0] == K
            # translation-row trick requires every segment's flat length % 3 == 0
            assert b.shape[1] % 3 == 0, "segment flat length must be multiple of 3"
        basis = jnp.concatenate(bases, axis=1).astype(jnp.float32)          # (K, N)
        template = jnp.concatenate(templates, axis=0).astype(jnp.float32)   # (N,)
        N = basis.shape[1]
        # translation rows: row j has 1 wherever flat index % 3 == j (exact in bf16)
        trans_rows = jnp.tile(jnp.eye(3, dtype=jnp.float32), (1, N // 3))   # (3, N)
        basis_aug = jnp.concatenate([basis, trans_rows], axis=0)            # (K+3, N)

        Kp_g = _round_up(K + 3, k_align)          # sublane-dim pad only (not 128)
        Np_g = _round_up(N, LANE)                 # lane-dim pad to 128
        groups.append(dict(k_off=k_off, K=K, n_off=n_off, N=N, n_span=Np_g,
                           sizes=[b.shape[1] for b in bases]))
        blocks.append((k_off, n_off, basis_aug, template))
        k_off += Kp_g
        n_off += Np_g

    Kp = k_off
    if n_off <= tn:
        TN = _round_up(n_off, LANE)
        Np = TN
    else:
        TN = tn
        Np = _round_up(n_off, TN)

    basis_pad = jnp.zeros((Kp, Np), jnp.float32)
    template_pad = jnp.zeros((1, Np), jnp.float32)
    for ko, no, ba, tp in blocks:
        basis_pad = basis_pad.at[ko:ko + ba.shape[0], no:no + ba.shape[1]].set(ba)
        template_pad = template_pad.at[0, no:no + tp.shape[0]].set(tp)

    return {
        "basis": basis_pad.astype(basis_dtype),   # (Kp, Np) bf16 (HBM-dominant)
        "template": template_pad,                 # (1, Np) f32
        "Kp": Kp, "Np": Np, "TN": TN,
        "groups": groups,
    }


# ----------------------------------------------------------------------------
# Fused forward (called under jit)
# ----------------------------------------------------------------------------
def fused_forward(coeffs, transes, scales, model):
    """Returns a list of (B, Pi, 3) arrays in group/segment order:
       seg = (template + coeff @ basis + trans) * |scale| for each model."""
    basis, template = model["basis"], model["template"]
    Kp, Np, TN = model["Kp"], model["Np"], model["TN"]
    groups = model["groups"]
    B = coeffs[0].shape[0]
    Bp = _round_up(B, 8)

    # block-diagonal coefficient assembly + per-column scale row (fused by jit)
    coeff_aug = jnp.zeros((Bp, Kp), jnp.float32)
    scale_row = jnp.zeros((1, Np), jnp.float32)
    for g, coeff, trans, scale in zip(groups, coeffs, transes, scales):
        assert coeff.shape[0] == B
        k0 = g["k_off"]
        coeff_aug = coeff_aug.at[:B, k0:k0 + g["K"]].set(coeff.astype(jnp.float32))
        coeff_aug = coeff_aug.at[:B, k0 + g["K"]:k0 + g["K"] + 3].set(
            trans.reshape(B, 3).astype(jnp.float32))
        scale_row = scale_row.at[:, g["n_off"]:g["n_off"] + g["n_span"]].set(
            jnp.abs(scale.reshape(())).astype(jnp.float32))

    out = pl.pallas_call(
        _fused_blend_kernel,
        out_shape=jax.ShapeDtypeStruct((Bp, Np), jnp.float32),
        grid_spec=pltpu.PrefetchScalarGridSpec(
            num_scalar_prefetch=0,
            grid=(Np // TN,),                                  # tile along N
            in_specs=[
                pl.BlockSpec((Bp, Kp), lambda j: (0, 0)),      # coeff, resident
                pl.BlockSpec((Kp, TN), lambda j: (0, j)),      # bf16 basis tile
                pl.BlockSpec((1, TN), lambda j: (0, j)),       # template tile
                pl.BlockSpec((1, TN), lambda j: (0, j)),       # scale row tile
            ],
            out_specs=pl.BlockSpec((Bp, TN), lambda j: (0, j)),  # lane-dense out
        ),
        compiler_params=pltpu.CompilerParams(
            # independent N tiles: lets v7x's two TensorCores split the basis
            # stream; harmless no-op on single-TC v5e/v6e.
            dimension_semantics=("parallel",)),
    )(coeff_aug, basis, template, scale_row)

    results = []
    for g in groups:
        off = g["n_off"]
        for sz in g["sizes"]:
            results.append(out[:B, off:off + sz].reshape(B, sz // 3, 3))
            off += sz
    return results


# ----------------------------------------------------------------------------
# Synthetic FLAME / MetaHuman linear models + MyModel parameters (deterministic)
# ----------------------------------------------------------------------------
class MyModelJax:
    # Small shapes for the demo; FLAME really has 5023 verts / 68 landmarks.
    N_SHAPE, N_EXP, N_POSE = 300, 100, 15            # FLAME coefficient dims
    FL_VERTS, FL_LMK = 128, 16                       # FLAME points
    MH_EXP = 35                                      # MetaHuman coefficients
    MH_VERTS, MH_LMK = 96, 16                        # MetaHuman points

    def __init__(self, obj_count, key):
        self.obj_count = obj_count
        keys = jax.random.split(key, 16)
        f32 = jnp.float32
        K = self.N_SHAPE + self.N_EXP + self.N_POSE

        # ---- synthetic FLAME model (would come from generic_model-2020.pkl) ----
        fl_template = 0.1 * jax.random.normal(keys[0], (self.FL_VERTS, 3), f32)
        fl_basis = 0.01 * jax.random.normal(keys[1], (K, self.FL_VERTS, 3), f32)
        lmk_idx = (jnp.arange(self.FL_LMK * 3) * 7) % self.FL_VERTS
        lmk_w = jax.nn.softmax(
            jax.random.normal(keys[2], (self.FL_LMK, 3), f32), axis=-1)
        L = jnp.zeros((self.FL_LMK, self.FL_VERTS), f32)
        L = L.at[jnp.repeat(jnp.arange(self.FL_LMK), 3),
                 lmk_idx].add(lmk_w.reshape(-1))
        self.fl_template = fl_template.reshape(-1)                          # (V*3,)
        self.fl_basis = fl_basis.reshape(K, -1)                             # (K, V*3)
        self.fl_lmk_template = (L @ fl_template).reshape(-1)                # (L*3,)
        self.fl_lmk_basis = jnp.einsum('lv,kvc->klc', L, fl_basis).reshape(K, -1)

        # ---- synthetic MetaHuman model (metahuman_model.pkl stand-in) ----
        mh_template = 0.1 * jax.random.normal(keys[3], (self.MH_VERTS, 3), f32)
        mh_basis = 0.01 * jax.random.normal(
            keys[4], (self.MH_EXP, self.MH_VERTS, 3), f32)
        mh_lidx = (jnp.arange(self.MH_LMK * 3) * 5) % self.MH_VERTS
        mh_lw = jax.nn.softmax(
            jax.random.normal(keys[5], (self.MH_LMK, 3), f32), axis=-1)
        Lm = jnp.zeros((self.MH_LMK, self.MH_VERTS), f32)
        Lm = Lm.at[jnp.repeat(jnp.arange(self.MH_LMK), 3),
                   mh_lidx].add(mh_lw.reshape(-1))
        self.mh_template = mh_template.reshape(-1)
        self.mh_basis = mh_basis.reshape(self.MH_EXP, -1)
        self.mh_lmk_template = (Lm @ mh_template).reshape(-1)
        self.mh_lmk_basis = jnp.einsum('lv,kvc->klc', Lm, mh_basis).reshape(
            self.MH_EXP, -1)

        # ---- single block-diagonal fused model (FLAME ++ MetaHuman) ----
        self.fused = build_block_diag_model(
            [
                ([self.fl_basis, self.fl_lmk_basis],
                 [self.fl_template, self.fl_lmk_template]),
                ([self.mh_basis, self.mh_lmk_basis],
                 [self.mh_template, self.mh_lmk_template]),
            ],
            tn=512)

        # ---- learnable parameters of MyModel (small deterministic values;
        #      the PyTorch module initializes most of these to zeros) ----
        self.shape_embedding = 0.1 * jax.random.normal(keys[6], (1, 300), f32)
        self.exp_embeddings = 0.1 * jax.random.normal(keys[7], (obj_count, 100), f32)
        self.jaw_embeddings = 0.1 * jax.random.normal(keys[8], (obj_count, 3), f32)
        self.other_pose_embedding = 0.1 * jax.random.normal(keys[9], (1, 12), f32)
        self.scale = jnp.array([900.0], f32)
        self.trans = 0.05 * jax.random.normal(keys[10], (obj_count, 1, 3), f32)
        self.exp_coeffs = 0.1 * jax.random.normal(keys[11], (obj_count, 35), f32)
        self.mh_scale = jnp.array([900.0], f32)
        self.mh_trans = 0.05 * jax.random.normal(keys[12], (obj_count, 1, 3), f32)

        # Single jit for the whole forward: coeff assembly, padding, the one
        # pallas_call and the output slicing/reshape all fuse into one dispatch.
        self._forward_jit = jax.jit(self._forward_impl)

    # ---- FLAME coefficient assembly (pure-JAX glue, mirrors the torch code) ----
    def _flame_coeffs(self, idx):
        B = idx.shape[0]
        other_pose = jnp.tile(self.other_pose_embedding, (B, 1))            # (B, 12)
        jaw = jnp.take(self.jaw_embeddings, idx, axis=0)                    # (B, 3)
        pose_params = jnp.concatenate(
            [other_pose[:, :6], jaw, other_pose[:, 6:]], axis=1)            # (B, 15)
        shape_params = jnp.tile(self.shape_embedding, (B, 1))               # (B, 300)
        exp_params = jnp.take(self.exp_embeddings, idx, axis=0)             # (B, 100)
        return jnp.concatenate([shape_params, exp_params, pose_params], axis=1)

    def _forward_impl(self, idx):
        # Note: as in the torch fitting loop, B == obj_count so that the
        # un-indexed self.trans / self.mh_trans broadcast is shape-consistent.
        coeff = self._flame_coeffs(idx)                                     # (B, 415)
        fl_verts, fl_lmk, mh_verts, mh_lmk = fused_forward(
            [coeff, self.exp_coeffs],
            [self.trans, self.mh_trans],
            [self.scale, self.mh_scale],
            self.fused)
        return fl_verts, fl_lmk, mh_verts, mh_lmk

    def forward(self, idx):
        return self._forward_jit(idx)

    # pure-JAX f32 reference (no Pallas) for correctness checking
    def forward_ref(self, idx):
        def ref(coeff, basis, template, trans, scale):
            B = coeff.shape[0]
            raw = template[None, :] + coeff @ basis                         # (B, N)
            raw = raw.reshape(B, -1, 3)
            return (raw + trans) * jnp.abs(scale)
        coeff = self._flame_coeffs(idx)
        return (ref(coeff, self.fl_basis, self.fl_template, self.trans, self.scale),
                ref(coeff, self.fl_lmk_basis, self.fl_lmk_template, self.trans,
                    self.scale),
                ref(self.exp_coeffs, self.mh_basis, self.mh_template,
                    self.mh_trans, self.mh_scale),
                ref(self.exp_coeffs, self.mh_lmk_basis, self.mh_lmk_template,
                    self.mh_trans, self.mh_scale))


if __name__ == "__main__":
    key = jax.random.PRNGKey(0)
    obj_count = 4
    model = MyModelJax(obj_count, key)

    # As in the fitting loop, idx enumerates the objects (so that the un-indexed
    # self.trans broadcast in the torch code is shape-consistent).
    idx = jnp.array([0, 2, 1, 3], dtype=jnp.int32)

    outs = model.forward(idx)
    outs = jax.block_until_ready(outs)
    refs = model.forward_ref(idx)

    # Tolerance: basis is stored bf16 (coeffs/trans/templates stay f32 and the
    # dot accumulates in f32); with |scale|=900 the absolute error from bf16
    # basis rounding is <~0.3 on outputs of magnitude ~1e2, so rtol dominates.
    for o, r in zip(outs, refs):
        assert o.shape == r.shape and o.dtype == jnp.float32
        assert jnp.allclose(o, r, rtol=1e-2, atol=0.6), "mismatch vs reference"

    print("KERNEL_OK")
</pallas_src>

<mosaic_0001>
module attributes {stable_mosaic.version = 11 : i64} {
  func.func @_fused_blend_kernel(%arg0: i32, %arg1: memref<8x480xf32, #tpu.memory_space<vmem>>, %arg2: memref<480x512xbf16, #tpu.memory_space<vmem>>, %arg3: memref<1x512xf32, #tpu.memory_space<vmem>>, %arg4: memref<1x512xf32, #tpu.memory_space<vmem>>, %arg5: memref<8x512xf32, #tpu.memory_space<vmem>>) attributes {dimension_semantics = [#tpu.dimension_semantics<parallel>], iteration_bounds = array<i64: 2>, scalar_prefetch = 0 : i64, scratch_operands = 0 : i64, tpu.core_type = #tpu.core_type<tc>, window_params = [{pipeline_mode = #tpu.pipeline_mode<synchronous>, transform_indices = @transform_0, window_bounds = array<i64: 8, 480>}, {transform_indices = @transform_1, window_bounds = array<i64: 480, 512>}, {transform_indices = @transform_2, window_bounds = array<i64: 1, 512>}, {transform_indices = @transform_3, window_bounds = array<i64: 1, 512>}, {transform_indices = @transform_4, window_bounds = array<i64: 8, 512>}]} {
    %c0 = arith.constant 0 : index
    %c0_0 = arith.constant 0 : index
    %0 = vector.load %arg1[%c0, %c0_0] : memref<8x480xf32, #tpu.memory_space<vmem>>, vector<8x480xf32>
    %c0_1 = arith.constant 0 : index
    %c0_2 = arith.constant 0 : index
    %1 = vector.load %arg2[%c0_1, %c0_2] : memref<480x512xbf16, #tpu.memory_space<vmem>>, vector<480x512xbf16>
    %2 = arith.extf %1 : vector<480x512xbf16> to vector<480x512xf32>
    %cst = arith.constant dense<0.000000e+00> : vector<8x512xf32>
    %3 = tpu.matmul %0, %2, %cst {dimension_numbers = #tpu.dot_dimension_numbers<[1], [0], [0], [1], [0, 0, 1, 1], [], []>} : vector<8x480xf32>, vector<480x512xf32>, vector<8x512xf32> -> vector<8x512xf32>
    %c0_3 = arith.constant 0 : index
    %c0_4 = arith.constant 0 : index
    %4 = vector.load %arg3[%c0_3, %c0_4] : memref<1x512xf32, #tpu.memory_space<vmem>>, vector<1x512xf32>
    %5 = vector.broadcast %4 : vector<1x512xf32> to vector<8x512xf32>
    %6 = arith.addf %5, %3 : vector<8x512xf32>
    %c0_5 = arith.constant 0 : index
    %c0_6 = arith.constant 0 : index
    %7 = vector.load %arg4[%c0_5, %c0_6] : memref<1x512xf32, #tpu.memory_space<vmem>>, vector<1x512xf32>
    %8 = vector.broadcast %7 : vector<1x512xf32> to vector<8x512xf32>
    %9 = arith.mulf %6, %8 : vector<8x512xf32>
    %c0_7 = arith.constant 0 : index
    %c0_8 = arith.constant 0 : index
    %10 = vector.load %arg5[%c0_7, %c0_8] : memref<8x512xf32, #tpu.memory_space<vmem>>, vector<8x512xf32>
    tpu.vector_store %arg5[%c0_7, %c0_8], %9 {strides = array<i32>} : memref<8x512xf32, #tpu.memory_space<vmem>>, vector<8x512xf32>,
    return
  }
  func.func @transform_0(%arg0: i32) -> (i32, i32) {
    %c0_i32 = arith.constant 0 : i32
    %c0_i32_0 = arith.constant 0 : i32
    %c0_i32_1 = arith.constant 0 : i32
    return %c0_i32, %c0_i32_0 : i32, i32
  }
  func.func @transform_1(%arg0: i32) -> (i32, i32) {
    %c0_i32 = arith.constant 0 : i32
    %c0_i32_0 = arith.constant 0 : i32
    return %c0_i32, %arg0 : i32, i32
  }
  func.func @transform_2(%arg0: i32) -> (i32, i32) {
    %c0_i32 = arith.constant 0 : i32
    %c0_i32_0 = arith.constant 0 : i32
    return %c0_i32, %arg0 : i32, i32
  }
  func.func @transform_3(%arg0: i32) -> (i32, i32) {
    %c0_i32 = arith.constant 0 : i32
    %c0_i32_0 = arith.constant 0 : i32
    return %c0_i32, %arg0 : i32, i32
  }
  func.func @transform_4(%arg0: i32) -> (i32, i32) {
    %c0_i32 = arith.constant 0 : i32
    %c0_i32_0 = arith.constant 0 : i32
    return %c0_i32, %arg0 : i32, i32
  }
}

</mosaic_0001>

<bundles_post_ra>
// kernel: _forward_impl.1
= control target key start
LH: loop header
LB: loop body
LE: loop exit
PB: predicated region body
PF: predicated region fallthrough
CT: control target
= control target key end

     0   :  { %9 = vsyncpa [#allocation3], 0  ;;  %s1460_s0 = inlined_call_operand.vmem [shape: f32[8,480], index: 0, kind: input, shape index: {}]   ;;  %s1461_s1 = inlined_call_operand.hbm [shape: bf16[480,1024], index: 1, kind: input, shape index: {}]   ;;  %s1462_s2 = inlined_call_operand.vmem [shape: f32[1,1024], index: 2, kind: input, shape index: {}]   ;;  %s1463_s3 = inlined_call_operand.vmem [shape: f32[1,1024], index: 3, kind: input, shape index: {}]   ;;  %s1464_s4 = inlined_call_operand.vmem [shape: f32[8,1024], index: 4, kind: output, shape index: {}]  }
   0x1   :  { %11 = vsyncpa [#allocation3 + $0x1], 0  ;;  %s1204_s15 = smov 0   ;;  %s1206_s16 = smov 0  }
   0x2   :  { %s1208_s17 = smov 0   ;;  %s1210_s18 = smov 0  }
   0x3 LB: > { %s1051_s19 = sadd.s32 4294967295, %s1173_s18   ;;  %s1224_s20 = sadd.s32 1, %s1173_s18   ;;  %s1173_s18 = sphi %s1210_s18, %s1472_s18   ;;  %s1169_s17 = sphi %s1208_s17, %s1471_s17   ;;  %s1165_s16 = sphi %s1206_s16, %s1470_s16   ;;  %s1161_s15 = sphi %s1204_s15, %s1469_s15  }
   0x4   : > { %s42_s21 = ssub.s32 %s1173_s18, %s1224_s20  ;;  %s45_s22 = sadd.s32 1, %s1169_s17 }
   0x5   : > { %p43_p0 = scmp.eq.s32.totalorder %s42_s21, 0  ;;  %p52_p1 = scmp.ne.s32.totalorder %s1169_s17, %s1165_s16 }
   0x6   : > { %p53_p2 = scmp.eq.s32.totalorder %s1173_s18, 0  ;;  %p58_p3 = scmp.ne.s32.totalorder %s1165_s16, %s1161_s15 }
   0x7   : > { %s1234_s23 = scalar_select %p43_p0, %s1169_s17, %s45_s22  }
   0x8   : > { %p54_p4 = por %p53_p2, %p52_p1  ;;  %p59_p5 = scmp.eq.s32.totalorder %s1051_s19, 0 }
   0x9   : > { %p1075_p6 = scmp.lt.s32.totalorder %s1173_s18, 2  ;;  %s163_s25 = sand.u32 1, %s1169_s17  }
   0xa   : > { %p1239_p7 = por %p59_p5, %p58_p3  ;;  %s1067_s26 = smul.u32 960, %s163_s25 }
   0xb   : > { %s1066_s27 = sshll.u32 %s1173_s18, 8  ;;  %p1245_p8 = pnand %p1075_p6, %p54_p4 }
   0xc   : > { %s1466_s24 = scalar_select %p1239_p7, 1, 0 }
   0xd   : > { %s1252_s5 = scalar_lea.hbm %s1461_s1, %s1066_s27  ;;  %s167_s6 = scalar_lea.vmem [#allocation2], %s1067_s26 }
   0xe   : > { %s174_s7 = sshll.u32 %s167_s6, 4  ;;  %s1256_s8 = scalar_lea.sflag [#allocation3], %s163_s25  ;;  %s1254_s7 = int_to_ptr.vmem [resolvable:$true] %s174_s7 }
   0xf   : > { %s1111_s9 = scalar_lea.hbm %s1252_s5, 15360  ;;  %p1113_p10 = pneg %p1245_p8 }
  0x10   : > { %p1112_p9 = scmp.ne.s32.totalorder %s1252_s5, %s1111_s9  ;;  %s1116_s12 = scalar_lea.hbm %s1461_s1, 30720 }
  0x11   : > { %p1117_p13 = scmp.lt.s32.totalorder %s1252_s5, %s1461_s1  ;;  %p1118_p0 = scmp.lt.s32.totalorder %s1116_s12, %s1111_s9 }
  0x12   : > { %p1114_p11 = pnand %p1113_p10, %p1112_p9 }
  0x13   : > { %p1119_p1 = por %p1118_p0, %p1117_p13 }
  0x14   : > { %p1115_p12 = pneg %p1114_p11 }
  0x16   : > { %p1120_p2 = pnand %p1119_p1, %p1115_p12 }
  0x18   : > { %1123 = shalt.err (!%p1120_p2)
}
  0x19   : > { %s1124_s15 = scalar_lea.vmem %s1254_s7, 15360  ;;  %s1175_s21 = smov [#allocation2]  }
  0x1a   : > { %p1125_p3 = scmp.ne.s32.totalorder %s1254_s7, %s1124_s15  ;;  %s1129_s22 = sshll.u32 %s1175_s21, 4  ;;  %s1130_s22 = int_to_ptr.vmem [resolvable:$false] %s1129_s22 }
  0x1b   : > { %s1131_s25 = scalar_lea.vmem %s1130_s22, 30720  ;;  %p1132_p6 = scmp.lt.s32.totalorder %s1254_s7, %s1130_s22 }
  0x1c   : > { %p1127_p4 = pnand %p1125_p3, %p1113_p10  ;;  %p1133_p9 = scmp.lt.s32.totalorder %s1131_s25, %s1124_s15 }
  0x1e   : > { %p1128_p5 = pneg %p1127_p4  ;;  %p1134_p11 = por %p1133_p9, %p1132_p6 }
  0x20   : > { %p1135_p7 = pnand %p1134_p11, %p1128_p5 }
  0x22   : > { %1138 = shalt.err (!%p1135_p7)
}
  0x23   : > { %s1176_s26 = smov 512   ;;  %s1177_s27 = smov 256  }
  0x24   : > { %s1178_s29 = smov 16   ;;  %p1057_p10 = scmp.ge.s32.totalorder %s1173_s18, 1 }
  0x25   : > { %1074 = dma.hbm_to_vmem [thread:$0]  (!%p1245_p8), %s1252_s5, 15360, %s1254_s7, %s1256_s8, %s1176_s26, %s1177_s27, %s1178_s29  }
  0x26   : > { %p198_p12 = scmp.lt.s32.totalorder %s1173_s18, 3 }
  0x28   : > { %p199_p13 = pnand %p1057_p10, %p198_p12 }
  0x29   : > { %s204_s30 = sand.u32 (!%p199_p13), 1, %s1165_s16   ;;  %p1468_p7 = scmp.ne.s32.totalorder (!%p199_p13), %s1466_s24, 0 }
  0x2a   : > { %202 = sbr.rel (%p199_p13) target bundleno = 377 (0x179), region = 36  ;;  %s205_s9 = scalar_lea.sflag (!%p199_p13), [#allocation3], %s204_s30 }
  0x2b   : > { %s1068_s6 = smul.u32 (!%p199_p13), 960, %s204_s30 }
  0x2d   : > { %s1280_s10 = scalar_lea.vmem (!%p199_p13), [#allocation2], %s1068_s6 }
  0x2f   : > { %1156 = dma.done.wait (%p1468_p7), %s205_s9, 15360  }
  0x30   : > { %1158 = vsyncadd (%p1468_p7), %s205_s9, 4294951936  ;;  %v292_v0 = vld [vmem:[%s1280_s10 + $0xf0] sm:$0xff]  ;;  %v290_v2 = vld [vmem:[%s1280_s10 + $0xe0] sm:$0xff]  ;;  %vm622_vm0 = vcmask 785408   ;;  %s1058_s14 = sshll.u32 %s1051_s19, 2 }
  0x31   : > { %v356_v1 = vld [vmem:[%s1280_s10 + $0x2f0] sm:$0xff]  ;;  %v443_v3 = vunpack.c.h.bf16 %v292_v0  ;;  %v442_v5 = vunpack.c.l.bf16 %v292_v0  ;;  %v354_v7 = vld [vmem:[%s1280_s10 + $0x2e0] sm:$0xff]  ;;  %v439_v10 = vunpack.c.h.bf16 %v290_v2  ;;  %v438_v12 = vunpack.c.l.bf16 %v290_v2  ;;  %p243_p8 = scmp.lt.s32.totalorder %s1058_s14, 7 }
  0x32   : > { %v571_v4 = vunpack.c.h.bf16 %v356_v1  ;;  %v570_v6 = vunpack.c.l.bf16 %v356_v1  ;;  %v288_v8 = vld [vmem:[%s1280_s10 + $0xd0] sm:$0xff]  ;;  %v567_v11 = vunpack.c.h.bf16 %v354_v7  ;;  %v566_v13 = vunpack.c.l.bf16 %v354_v7  ;;  %v286_v14 = vld [vmem:[%s1280_s10 + $0xc0] sm:$0xff] }
  0x33   : > { %v352_v9 = vld [vmem:[%s1280_s10 + $0x2d0] sm:$0xff]  ;;  %v350_v15 = vld [vmem:[%s1280_s10 + $0x2c0] sm:$0xff]  ;;  %626 = vmatprep.subr.mxu0 %v443_v3  ;;  %v435_v16 = vunpack.c.h.bf16 %v288_v8  ;;  %v434_v18 = vunpack.c.l.bf16 %v288_v8  ;;  %v431_v22 = vunpack.c.h.bf16 %v286_v14  ;;  %v430_v24 = vunpack.c.l.bf16 %v286_v14  ;;  %s1474_s14 = smov (!%p243_p8, %s1058_s14), 7 }
  0x34   : > { %697 = vmatprep.subr.mxu1 %v571_v4  ;;  %v563_v17 = vunpack.c.h.bf16 %v352_v9  ;;  %627 = vmatpush1.msra.mxu0 %v442_v5  ;;  %v562_v19 = vunpack.c.l.bf16 %v352_v9  ;;  %v284_v20 = vld [vmem:[%s1280_s10 + $0xb0] sm:$0xff]  ;;  %v559_v23 = vunpack.c.h.bf16 %v350_v15  ;;  %v558_v25 = vunpack.c.l.bf16 %v350_v15  ;;  %v282_v26 = vld [vmem:[%s1280_s10 + $0xa0] sm:$0xff]  ;;  %s245_s22 = scalar_lea.vmem %s1462_s2, %s1474_s14  ;;  %s250_s27 = scalar_lea.vmem %s1463_s3, %s1474_s14 }
  0x35   : > { %698 = vmatpush1.msra.mxu1 %v570_v6  ;;  %v348_v21 = vld [vmem:[%s1280_s10 + $0x2b0] sm:$0xff]  ;;  %628 = vmatprep.subr.mxu0 %v439_v10  ;;  %v346_v27 = vld [vmem:[%s1280_s10 + $0x2a0] sm:$0xff]  ;;  %v427_v28 = vunpack.c.h.bf16 %v284_v20  ;;  %v426_v30 = vunpack.c.l.bf16 %v284_v20  ;;  %v423_v34 = vunpack.c.h.bf16 %v282_v26  ;;  %v422_v36 = vunpack.c.l.bf16 %v282_v26  ;;  %s1061_s18 = sshll.u32 %s1474_s14, 3 }
  0x36   : > { %699 = vmatprep.subr.mxu1 %v567_v11  ;;  %629 = vmatpush1.msra.mxu0 %v438_v12  ;;  %v555_v29 = vunpack.c.h.bf16 %v348_v21  ;;  %v554_v31 = vunpack.c.l.bf16 %v348_v21  ;;  %v280_v32 = vld [vmem:[%s1280_s10 + $0x90] sm:$0xff]  ;;  %v551_v35 = vunpack.c.h.bf16 %v346_v27  ;;  %v550_v37 = vunpack.c.l.bf16 %v346_v27  ;;  %v278_v38 = vld [vmem:[%s1280_s10 + $0x80] sm:$0xff]  ;;  %s256_s30 = scalar_lea.vmem %s1464_s4, %s1061_s18 }
  0x37   : > { %700 = vmatpush1.msra.mxu1 %v566_v13  ;;  %630 = vmatprep.subr.mxu0 %v435_v16  ;;  %v344_v33 = vld [vmem:[%s1280_s10 + $0x290] sm:$0xff]  ;;  %v342_v39 = vld [vmem:[%s1280_s10 + $0x280] sm:$0xff]  ;;  %v419_v40 = vunpack.c.h.bf16 %v280_v32  ;;  %v418_v42 = vunpack.c.l.bf16 %v280_v32  ;;  %v415_v46 = vunpack.c.h.bf16 %v278_v38  ;;  %v414_v48 = vunpack.c.l.bf16 %v278_v38 }
  0x38   : > { %701 = vmatprep.subr.mxu1 %v563_v17  ;;  %631 = vmatpush1.msra.mxu0 %v434_v18  ;;  %v547_v41 = vunpack.c.h.bf16 %v344_v33  ;;  %v546_v43 = vunpack.c.l.bf16 %v344_v33  ;;  %v276_v44 = vld [vmem:[%s1280_s10 + $0x70] sm:$0xff]  ;;  %v543_v47 = vunpack.c.h.bf16 %v342_v39  ;;  %v542_v49 = vunpack.c.l.bf16 %v342_v39  ;;  %v274_v50 = vld [vmem:[%s1280_s10 + $0x60] sm:$0xff] }
  0x39   : > { %702 = vmatpush1.msra.mxu1 %v562_v19  ;;  %632 = vmatprep.subr.mxu0 %v431_v22  ;;  %v340_v45 = vld [vmem:[%s1280_s10 + $0x270] sm:$0xff]  ;;  %v338_v51 = vld [vmem:[%s1280_s10 + $0x260] sm:$0xff]  ;;  %v411_v52 = vunpack.c.h.bf16 %v276_v44  ;;  %v410_v54 = vunpack.c.l.bf16 %v276_v44  ;;  %v407_v58 = vunpack.c.h.bf16 %v274_v50  ;;  %v406_v60 = vunpack.c.l.bf16 %v274_v50 }
  0x3a   : > { %703 = vmatprep.subr.mxu1 %v559_v23  ;;  %633 = vmatpush1.msra.mxu0 %v430_v24  ;;  %v539_v53 = vunpack.c.h.bf16 %v340_v45  ;;  %v538_v55 = vunpack.c.l.bf16 %v340_v45  ;;  %v272_v56 = vld [vmem:[%s1280_s10 + $0x50] sm:$0xff]  ;;  %v535_v59 = vunpack.c.h.bf16 %v338_v51  ;;  %v534_v61 = vunpack.c.l.bf16 %v338_v51  ;;  %v270_v62 = vld [vmem:[%s1280_s10 + $0x40] sm:$0xff] }
  0x3b   : > { %704 = vmatpush1.msra.mxu1 %v558_v25  ;;  %634 = vmatprep.subr.mxu0 %v427_v28  ;;  %v336_v57 = vld [vmem:[%s1280_s10 + $0x250] sm:$0xff]  ;;  %v334_v63 = vld [vmem:[%s1280_s10 + $0x240] sm:$0xff]  ;;  %v403_v0 = vunpack.c.h.bf16 %v272_v56  ;;  %v402_v2 = vunpack.c.l.bf16 %v272_v56  ;;  %v399_v6 = vunpack.c.h.bf16 %v270_v62  ;;  %v398_v8 = vunpack.c.l.bf16 %v270_v62 }
  0x3c   : > { %705 = vmatprep.subr.mxu1 %v555_v29  ;;  %635 = vmatpush1.msra.mxu0 %v426_v30  ;;  %v531_v1 = vunpack.c.h.bf16 %v336_v57  ;;  %v530_v3 = vunpack.c.l.bf16 %v336_v57  ;;  %v268_v4 = vld [vmem:[%s1280_s10 + $0x30] sm:$0xff]  ;;  %v527_v7 = vunpack.c.h.bf16 %v334_v63  ;;  %v526_v9 = vunpack.c.l.bf16 %v334_v63  ;;  %v266_v10 = vld [vmem:[%s1280_s10 + $0x20] sm:$0xff] }
  0x3d   : > { %706 = vmatpush1.msra.mxu1 %v554_v31  ;;  %636 = vmatprep.subr.mxu0 %v423_v34  ;;  %v332_v5 = vld [vmem:[%s1280_s10 + $0x230] sm:$0xff]  ;;  %v330_v11 = vld [vmem:[%s1280_s10 + $0x220] sm:$0xff]  ;;  %v395_v12 = vunpack.c.h.bf16 %v268_v4  ;;  %v394_v14 = vunpack.c.l.bf16 %v268_v4  ;;  %v391_v18 = vunpack.c.h.bf16 %v266_v10  ;;  %v390_v20 = vunpack.c.l.bf16 %v266_v10 }
  0x3e   : > { %707 = vmatprep.subr.mxu1 %v551_v35  ;;  %637 = vmatpush1.msra.mxu0 %v422_v36  ;;  %v523_v13 = vunpack.c.h.bf16 %v332_v5  ;;  %v522_v15 = vunpack.c.l.bf16 %v332_v5  ;;  %v264_v16 = vld [vmem:[%s1280_s10 + $0x10] sm:$0xff]  ;;  %v519_v19 = vunpack.c.h.bf16 %v330_v11  ;;  %v518_v21 = vunpack.c.l.bf16 %v330_v11  ;;  %v262_v22 = vld [vmem:[%s1280_s10] sm:$0xff] }
  0x3f   : > { %708 = vmatpush1.msra.mxu1 %v550_v37  ;;  %638 = vmatprep.subr.mxu0 %v419_v40  ;;  %v328_v17 = vld [vmem:[%s1280_s10 + $0x210] sm:$0xff]  ;;  %v326_v23 = vld [vmem:[%s1280_s10 + $0x200] sm:$0xff]  ;;  %v387_v24 = vunpack.c.h.bf16 %v264_v16  ;;  %v386_v26 = vunpack.c.l.bf16 %v264_v16  ;;  %v383_v30 = vunpack.c.h.bf16 %v262_v22  ;;  %v382_v32 = vunpack.c.l.bf16 %v262_v22 }
  0x40   : > { %709 = vmatprep.subr.mxu1 %v547_v41  ;;  %639 = vmatpush1.msra.mxu0 %v418_v42  ;;  %v515_v25 = vunpack.c.h.bf16 %v328_v17  ;;  %v514_v27 = vunpack.c.l.bf16 %v328_v17  ;;  %v324_v28 = vld [vmem:[%s1280_s10 + $0x1f0] sm:$0xff]  ;;  %v511_v31 = vunpack.c.h.bf16 %v326_v23  ;;  %v510_v33 = vunpack.c.l.bf16 %v326_v23  ;;  %v322_v34 = vld [vmem:[%s1280_s10 + $0x1e0] sm:$0xff] }
  0x41   : > { %710 = vmatpush1.msra.mxu1 %v546_v43  ;;  %640 = vmatprep.subr.mxu0 %v415_v46  ;;  %v380_v29 = vld [vmem:[%s1280_s10 + $0x3b0] sm:$0xff]  ;;  %v378_v35 = vld [vmem:[%s1280_s10 + $0x3a0] sm:$0xff]  ;;  %v507_v36 = vunpack.c.h.bf16 %v324_v28  ;;  %v506_v38 = vunpack.c.l.bf16 %v324_v28  ;;  %v503_v42 = vunpack.c.h.bf16 %v322_v34  ;;  %v502_v44 = vunpack.c.l.bf16 %v322_v34 }
  0x42   : > { %711 = vmatprep.subr.mxu1 %v543_v47  ;;  %641 = vmatpush1.msra.mxu0 %v414_v48  ;;  %v619_v37 = vunpack.c.h.bf16 %v380_v29  ;;  %v618_v39 = vunpack.c.l.bf16 %v380_v29  ;;  %v320_v40 = vld [vmem:[%s1280_s10 + $0x1d0] sm:$0xff]  ;;  %v615_v43 = vunpack.c.h.bf16 %v378_v35  ;;  %v614_v45 = vunpack.c.l.bf16 %v378_v35  ;;  %v318_v46 = vld [vmem:[%s1280_s10 + $0x1c0] sm:$0xff] }
  0x43   : > { %712 = vmatpush1.msra.mxu1 %v542_v49  ;;  %642 = vmatprep.subr.mxu0 %v411_v52  ;;  %v376_v41 = vld [vmem:[%s1280_s10 + $0x390] sm:$0xff]  ;;  %v374_v47 = vld [vmem:[%s1280_s10 + $0x380] sm:$0xff]  ;;  %v499_v48 = vunpack.c.h.bf16 %v320_v40  ;;  %v498_v50 = vunpack.c.l.bf16 %v320_v40  ;;  %v494_v56 = vunpack.c.l.bf16 %v318_v46 }
  0x44   : > { %713 = vmatprep.subr.mxu1 %v539_v53  ;;  %643 = vmatpush1.msra.mxu0 %v410_v54  ;;  %v611_v49 = vunpack.c.h.bf16 %v376_v41  ;;  %v610_v51 = vunpack.c.l.bf16 %v376_v41  ;;  %v316_v52 = vld [vmem:[%s1280_s10 + $0x1b0] sm:$0xff]  ;;  %v495_v54 = vunpack.c.h.bf16 %v318_v46  ;;  %v606_v57 = vunpack.c.l.bf16 %v374_v47 }
  0x45   : > { %714 = vmatpush1.msra.mxu1 %v538_v55  ;;  %644 = vmatprep.subr.mxu0 %v407_v58  ;;  %v372_v53 = vld [vmem:[%s1280_s10 + $0x370] sm:$0xff]  ;;  %v607_v55 = vunpack.c.h.bf16 %v374_v47  ;;  %v314_v58 = vld [vmem:[%s1280_s10 + $0x1a0] sm:$0xff]  ;;  %v490_v62 = vunpack.c.l.bf16 %v316_v52 }
  0x46   : > { %715 = vmatprep.subr.mxu1 %v535_v59  ;;  %645 = vmatpush1.msra.mxu0 %v406_v60  ;;  %v370_v59 = vld [vmem:[%s1280_s10 + $0x360] sm:$0xff]  ;;  %v491_v60 = vunpack.c.h.bf16 %v316_v52  ;;  %v602_v63 = vunpack.c.l.bf16 %v372_v53  ;;  %v486_v4 = vunpack.c.l.bf16 %v314_v58  ;;  %v1354_v47 = vld [vmem:[%s1460_s0 + $0x10] sm:$0xff] }
  0x47   : > { %716 = vmatpush1.msra.mxu1 %v534_v61  ;;  %646 = vmatprep.subr.mxu0 %v403_v0  ;;  %v603_v61 = vunpack.c.h.bf16 %v372_v53  ;;  %v312_v0 = vld [vmem:[%s1280_s10 + $0x190] sm:$0xff]  ;;  %v598_v5 = vunpack.c.l.bf16 %v370_v59 }
  0x48   : > { %717 = vmatprep.subr.mxu1 %v531_v1  ;;  %647 = vmatpush1.msra.mxu0 %v402_v2  ;;  %v368_v1 = vld [vmem:[%s1280_s10 + $0x350] sm:$0xff]  ;;  %v487_v2 = vunpack.c.h.bf16 %v314_v58  ;;  %v482_v10 = vunpack.c.l.bf16 %v312_v0 }
  0x49   : > { %718 = vmatpush1.msra.mxu1 %v530_v3  ;;  %648 = vmatprep.subr.mxu0 %v399_v6  ;;  %v599_v3 = vunpack.c.h.bf16 %v370_v59  ;;  %v310_v6 = vld [vmem:[%s1280_s10 + $0x180] sm:$0xff]  ;;  %v594_v11 = vunpack.c.l.bf16 %v368_v1 }
  0x4a   : > { %719 = vmatprep.subr.mxu1 %v527_v7  ;;  %649 = vmatpush1.msra.mxu0 %v398_v8  ;;  %v366_v7 = vld [vmem:[%s1280_s10 + $0x340] sm:$0xff]  ;;  %v483_v8 = vunpack.c.h.bf16 %v312_v0  ;;  %v478_v16 = vunpack.c.l.bf16 %v310_v6  ;;  %v285_v0 = vld [vmem:[%s1280_s10 + $0xb8] sm:$0xff] }
  0x4b   : > { %720 = vmatpush1.msra.mxu1 %v526_v9  ;;  %650 = vmatprep.subr.mxu0 %v395_v12  ;;  %v595_v9 = vunpack.c.h.bf16 %v368_v1  ;;  %v308_v12 = vld [vmem:[%s1280_s10 + $0x170] sm:$0xff]  ;;  %v590_v17 = vunpack.c.l.bf16 %v366_v7  ;;  %v357_v1 = vld [vmem:[%s1280_s10 + $0x2f8] sm:$0xff] }
  0x4c   : > { %721 = vmatprep.subr.mxu1 %v523_v13  ;;  %651 = vmatpush1.msra.mxu0 %v394_v14  ;;  %v364_v13 = vld [vmem:[%s1280_s10 + $0x330] sm:$0xff]  ;;  %v479_v14 = vunpack.c.h.bf16 %v310_v6  ;;  %v474_v22 = vunpack.c.l.bf16 %v308_v12  ;;  %v355_v6 = vld [vmem:[%s1280_s10 + $0x2e8] sm:$0xff] }
  0x4d   : > { %722 = vmatpush1.msra.mxu1 %v522_v15  ;;  %652 = vmatprep.subr.mxu0 %v391_v18  ;;  %v591_v15 = vunpack.c.h.bf16 %v366_v7  ;;  %v306_v18 = vld [vmem:[%s1280_s10 + $0x160] sm:$0xff]  ;;  %v586_v23 = vunpack.c.l.bf16 %v364_v13 }
  0x4e   : > { %723 = vmatprep.subr.mxu1 %v519_v19  ;;  %653 = vmatpush1.msra.mxu0 %v390_v20  ;;  %v362_v19 = vld [vmem:[%s1280_s10 + $0x320] sm:$0xff]  ;;  %v475_v20 = vunpack.c.h.bf16 %v308_v12  ;;  %v470_v28 = vunpack.c.l.bf16 %v306_v18  ;;  %v281_v12 = vld [vmem:[%s1280_s10 + $0x98] sm:$0xff] }
  0x4f   : > { %724 = vmatpush1.msra.mxu1 %v518_v21  ;;  %654 = vmatprep.subr.mxu0 %v387_v24  ;;  %v587_v21 = vunpack.c.h.bf16 %v364_v13  ;;  %v304_v24 = vld [vmem:[%s1280_s10 + $0x150] sm:$0xff]  ;;  %v582_v29 = vunpack.c.l.bf16 %v362_v19  ;;  %v1375_v7 = vld [vmem:[%s1460_s0] sm:$0xff]  ;;  %v353_v13 = vld [vmem:[%s1280_s10 + $0x2d8] sm:$0xff] }
  0x50   : > { %725 = vmatprep.subr.mxu1 %v515_v25  ;;  %655 = vmatpush1.msra.mxu0 %v386_v26  ;;  %v360_v25 = vld [vmem:[%s1280_s10 + $0x310] sm:$0xff]  ;;  %v471_v26 = vunpack.c.h.bf16 %v306_v18  ;;  %v466_v34 = vunpack.c.l.bf16 %v304_v24  ;;  %v279_v18 = vld [vmem:[%s1280_s10 + $0x88] sm:$0xff] }
  0x51   : > { %726 = vmatpush1.msra.mxu1 %v514_v27  ;;  %656 = vmatprep.subr.mxu0 %v383_v30  ;;  %v583_v27 = vunpack.c.h.bf16 %v362_v19  ;;  %v302_v30 = vld [vmem:[%s1280_s10 + $0x140] sm:$0xff]  ;;  %v578_v35 = vunpack.c.l.bf16 %v360_v25  ;;  %v351_v19 = vld [vmem:[%s1280_s10 + $0x2c8] sm:$0xff] }
  0x52   : > { %727 = vmatprep.subr.mxu1 %v511_v31  ;;  %657 = vmatpush1.msra.mxu0 %v382_v32  ;;  %v358_v31 = vld [vmem:[%s1280_s10 + $0x300] sm:$0xff]  ;;  %v467_v32 = vunpack.c.h.bf16 %v304_v24  ;;  %v462_v40 = vunpack.c.l.bf16 %v302_v30  ;;  %v277_v24 = vld [vmem:[%s1280_s10 + $0x78] sm:$0xff] }
  0x53   : > { %728 = vmatpush1.msra.mxu1 %v510_v33  ;;  %658 = vmatprep.subr.mxu0 %v507_v36  ;;  %v579_v33 = vunpack.c.h.bf16 %v360_v25  ;;  %v300_v36 = vld [vmem:[%s1280_s10 + $0x130] sm:$0xff]  ;;  %v574_v41 = vunpack.c.l.bf16 %v358_v31  ;;  %v349_v25 = vld [vmem:[%s1280_s10 + $0x2b8] sm:$0xff] }
  0x54   : > { %737 = vmatprep.subr.mxu1 %v619_v37  ;;  %659 = vmatpush2.msra.mxu0 %v506_v38  ;;  %v463_v37 = vunpack.c.h.bf16 %v302_v30  ;;  %v575_v38 = vunpack.c.h.bf16 %v358_v31  ;;  %v275_v30 = vld [vmem:[%s1280_s10 + $0x68] sm:$0xff] }
  0x55   : > { %738 = vmatpush2.msra.mxu1 %v618_v39  ;;  %660 = vmatprep.subr.mxu0 %v503_v42  ;;  %v293_v39 = vld [vmem:[%s1280_s10 + $0xf8] sm:$0xff]  ;;  %v459_v42 = vunpack.c.h.bf16 %v300_v36  ;;  %v347_v31 = vld [vmem:[%s1280_s10 + $0x2a8] sm:$0xff] }
  0x56   : > { %739 = vmatprep.subr.mxu1 %v615_v43  ;;  %661 = vmatpush2.msra.mxu0 %v502_v44  ;;  %v298_v43 = vld [vmem:[%s1280_s10 + $0x120] sm:$0xff]  ;;  %v291_v44 = vld [vmem:[%s1280_s10 + $0xe8] sm:$0xff]  ;;  %v445_v46 = vunpack.c.h.bf16 %v293_v39 }
  0x57   : > { %740 = vmatpush2.msra.mxu1 %v614_v45  ;;  %662 = vmatprep.subr.mxu0 %v499_v48  ;;  %v1349_v45 = vld [vmem:[%s1460_s0 + $0x18] sm:$0xff]  ;;  %v444_v48 = vunpack.c.l.bf16 %v293_v39  ;;  %v455_v52 = vunpack.c.h.bf16 %v298_v43  ;;  %v441_v53 = vunpack.c.h.bf16 %v291_v44  ;;  %v553_v39 = vunpack.c.h.bf16 %v347_v31 }
  0x58   : > { %741 = vmatprep.subr.mxu1 %v611_v49  ;;  %663 = vmatpush2.msra.mxu0 %v498_v50  ;;  %v458_v49 = vunpack.c.l.bf16 %v300_v36  ;;  %v296_v50 = vld [vmem:[%s1280_s10 + $0x110] sm:$0xff]  ;;  %v273_v36 = vld [vmem:[%s1280_s10 + $0x58] sm:$0xff] }
  0x59   : > { %742 = vmatpush2.msra.mxu1 %v610_v51  ;;  %664 = vmatprep.subr.mxu0 %v495_v54  ;;  %v289_v51 = vld [vmem:[%s1280_s10 + $0xd8] sm:$0xff]  ;;  %v440_v54 = vunpack.c.l.bf16 %v291_v44  ;;  %v451_v58 = vunpack.c.h.bf16 %v296_v50  ;;  %v405_v44 = vunpack.c.h.bf16 %v273_v36 }
  0x5a   : > { %743 = vmatprep.subr.mxu1 %v607_v55  ;;  %665 = vmatpush2.msra.mxu0 %v494_v56  ;;  %v454_v55 = vunpack.c.l.bf16 %v298_v43  ;;  %v294_v56 = vld [vmem:[%s1280_s10 + $0x100] sm:$0xff]  ;;  %v437_v59 = vunpack.c.h.bf16 %v289_v51  ;;  %v343_v43 = vld [vmem:[%s1280_s10 + $0x288] sm:$0xff] }
  0x5b   : > { %744 = vmatpush2.msra.mxu1 %v606_v57  ;;  %666 = vmatprep.subr.mxu0 %v491_v60  ;;  %v287_v57 = vld [vmem:[%s1280_s10 + $0xc8] sm:$0xff]  ;;  %v436_v60 = vunpack.c.l.bf16 %v289_v51  ;;  %v341_v51 = vld [vmem:[%s1280_s10 + $0x278] sm:$0xff] }
  0x5c   : > { %745 = vmatprep.subr.mxu1 %v603_v61  ;;  %667 = vmatpush2.msra.mxu0 %v490_v62  ;;  %v450_v61 = vunpack.c.l.bf16 %v296_v50  ;;  %v447_v62 = vunpack.c.h.bf16 %v294_v56  ;;  %v269_v50 = vld [vmem:[%s1280_s10 + $0x38] sm:$0xff] }
  0x5d   : > { %746 = vmatpush2.msra.mxu1 %v602_v63  ;;  %668 = vmatprep.subr.mxu0 %v487_v2  ;;  %v433_v63 = vunpack.c.h.bf16 %v287_v57  ;;  %v446_v2 = vunpack.c.l.bf16 %v294_v56  ;;  %v267_v56 = vld [vmem:[%s1280_s10 + $0x28] sm:$0xff] }
  0x5e   : > { %747 = vmatprep.subr.mxu1 %v599_v3  ;;  %669 = vmatpush2.msra.mxu0 %v486_v4  ;;  %v432_v3 = vunpack.c.l.bf16 %v287_v57  ;;  %v1368_v4 = vld [vmem:[%s1460_s0 + $0x8] sm:$0xff] }
  0x5f   : > { %748 = vmatpush2.msra.mxu1 %v598_v5  ;;  %670 = vmatprep.subr.mxu0 %v483_v8  ;;  %v283_v5 = vld [vmem:[%s1280_s10 + $0xa8] sm:$0xff]  ;;  %v429_v8 = vunpack.c.h.bf16 %v285_v0 }
  0x60   : > { %749 = vmatprep.subr.mxu1 %v595_v9  ;;  %671 = vmatpush2.msra.mxu0 %v482_v10  ;;  %v573_v9 = vunpack.c.h.bf16 %v357_v1  ;;  %v428_v10 = vunpack.c.l.bf16 %v285_v0  ;;  %v339_v57 = vld [vmem:[%s1280_s10 + $0x268] sm:$0xff]  ;;  %v393_v0 = vunpack.c.h.bf16 %v267_v56 }
  0x61   : > { %750 = vmatpush2.msra.mxu1 %v594_v11  ;;  %672 = vmatprep.subr.mxu0 %v479_v14  ;;  %v572_v11 = vunpack.c.l.bf16 %v357_v1  ;;  %v425_v14 = vunpack.c.h.bf16 %v283_v5  ;;  %v537_v1 = vunpack.c.h.bf16 %v339_v57 }
  0x62   : > { %751 = vmatprep.subr.mxu1 %v591_v15  ;;  %673 = vmatpush2.msra.mxu0 %v478_v16  ;;  %v569_v15 = vunpack.c.h.bf16 %v355_v6  ;;  %v424_v16 = vunpack.c.l.bf16 %v283_v5  ;;  %v263_v5 = vld [vmem:[%s1280_s10 + $0x8] sm:$0xff] }
  0x63   : > { %752 = vmatpush2.msra.mxu1 %v590_v17  ;;  %674 = vmatprep.subr.mxu0 %v475_v20  ;;  %v568_v17 = vunpack.c.l.bf16 %v355_v6  ;;  %v421_v20 = vunpack.c.h.bf16 %v281_v12  ;;  %v335_v6 = vld [vmem:[%s1280_s10 + $0x248] sm:$0xff] }
  0x64   : > { %753 = vmatprep.subr.mxu1 %v587_v21  ;;  %675 = vmatpush2.msra.mxu0 %v474_v22  ;;  %v565_v21 = vunpack.c.h.bf16 %v353_v13  ;;  %v420_v22 = vunpack.c.l.bf16 %v281_v12  ;;  %v325_v12 = vld [vmem:[%s1280_s10 + $0x1f8] sm:$0xff] }
  0x65   : > { %754 = vmatpush2.msra.mxu1 %v586_v23  ;;  %676 = vmatprep.subr.mxu0 %v471_v26  ;;  %v564_v23 = vunpack.c.l.bf16 %v353_v13  ;;  %v417_v26 = vunpack.c.h.bf16 %v279_v18  ;;  %v333_v13 = vld [vmem:[%s1280_s10 + $0x238] sm:$0xff] }
  0x66   : > { %755 = vmatprep.subr.mxu1 %v583_v27  ;;  %677 = vmatpush2.msra.mxu0 %v470_v28  ;;  %v561_v27 = vunpack.c.h.bf16 %v351_v19  ;;  %v416_v28 = vunpack.c.l.bf16 %v279_v18  ;;  %v323_v18 = vld [vmem:[%s1280_s10 + $0x1e8] sm:$0xff] }
  0x67   : > { %756 = vmatpush2.msra.mxu1 %v582_v29  ;;  %678 = vmatprep.subr.mxu0 %v467_v32  ;;  %v560_v29 = vunpack.c.l.bf16 %v351_v19  ;;  %v413_v32 = vunpack.c.h.bf16 %v277_v24  ;;  %v331_v19 = vld [vmem:[%s1280_s10 + $0x228] sm:$0xff] }
  0x68   : > { %757 = vmatprep.subr.mxu1 %v579_v33  ;;  %679 = vmatpush2.msra.mxu0 %v466_v34  ;;  %v557_v33 = vunpack.c.h.bf16 %v349_v25  ;;  %v412_v34 = vunpack.c.l.bf16 %v277_v24  ;;  %v321_v24 = vld [vmem:[%s1280_s10 + $0x1d8] sm:$0xff] }
  0x69   : > { %758 = vmatpush2.msra.mxu1 %v578_v35  ;;  %680 = vmatprep.subr.mxu0 %v463_v37  ;;  %v556_v35 = vunpack.c.l.bf16 %v349_v25  ;;  %v345_v37 = vld [vmem:[%s1280_s10 + $0x298] sm:$0xff] }
  0x6a   : > { %759 = vmatprep.subr.mxu1 %v575_v38  ;;  %681 = vmatpush2.msra.mxu0 %v462_v40  ;;  %v409_v38 = vunpack.c.h.bf16 %v275_v30  ;;  %v408_v40 = vunpack.c.l.bf16 %v275_v30  ;;  %v329_v25 = vld [vmem:[%s1280_s10 + $0x218] sm:$0xff]  ;;  %v319_v30 = vld [vmem:[%s1280_s10 + $0x1c8] sm:$0xff] }
  0x6b   : > { %760 = vmatpush2.msra.mxu1 %v574_v41  ;;  %1062 = vmatprep.mubr.msk.f32.mxu1 %vm622_vm0, %v1349_v45  ;;  %v552_v41 = vunpack.c.l.bf16 %v347_v31  ;;  %v327_v31 = vld [vmem:[%s1280_s10 + $0x208] sm:$0xff] }
  0x6c   : > { %682 = vmatprep.subr.mxu0 %v459_v42  ;;  %762 = vmatmul.mubr.f32.vlgmr.msra.gmra.mxu1 %v1354_v47  ;;  %v271_v42 = vld [vmem:[%s1280_s10 + $0x48] sm:$0xff] }
  0x6d   : > { %768 = vmatprep.subr.mxu1 %v445_v46  ;;  %683 = vmatpush2.msra.mxu0 %v458_v49  ;;  %v549_v46 = vunpack.c.h.bf16 %v345_v37  ;;  %v548_v49 = vunpack.c.l.bf16 %v345_v37  ;;  %v381_v37 = vld [vmem:[%s1280_s10 + $0x3b8] sm:$0xff] }
  0x6e   : > { %769 = vmatpush1.msra.mxu1 %v444_v48  ;;  %684 = vmatprep.subr.mxu0 %v455_v52  ;;  %v404_v48 = vunpack.c.l.bf16 %v273_v36  ;;  %v401_v52 = vunpack.c.h.bf16 %v271_v42  ;;  %v317_v36 = vld [vmem:[%s1280_s10 + $0x1b8] sm:$0xff] }
  0x6f   : > { %770 = vmatprep.subr.mxu1 %v441_v53  ;;  %685 = vmatpush2.msra.mxu0 %v454_v55  ;;  %v545_v53 = vunpack.c.h.bf16 %v343_v43  ;;  %v544_v55 = vunpack.c.l.bf16 %v343_v43  ;;  %v379_v43 = vld [vmem:[%s1280_s10 + $0x3a8] sm:$0xff] }
  0x70   : > { %771 = vmatpush1.msra.mxu1 %v440_v54  ;;  %686 = vmatprep.subr.mxu0 %v451_v58  ;;  %v400_v54 = vunpack.c.l.bf16 %v271_v42  ;;  %v397_v58 = vunpack.c.h.bf16 %v269_v50  ;;  %v315_v42 = vld [vmem:[%s1280_s10 + $0x1a8] sm:$0xff] }
  0x71   : > { %772 = vmatprep.subr.mxu1 %v437_v59  ;;  %687 = vmatpush2.msra.mxu0 %v450_v61  ;;  %v541_v59 = vunpack.c.h.bf16 %v341_v51  ;;  %v540_v61 = vunpack.c.l.bf16 %v341_v51  ;;  %v377_v51 = vld [vmem:[%s1280_s10 + $0x398] sm:$0xff] }
  0x72   : > { %773 = vmatpush1.msra.mxu1 %v436_v60  ;;  %688 = vmatprep.subr.mxu0 %v447_v62  ;;  %v396_v60 = vunpack.c.l.bf16 %v269_v50  ;;  %v265_v62 = vld [vmem:[%s1280_s10 + $0x18] sm:$0xff] }
  0x73   : > { %774 = vmatprep.subr.mxu1 %v433_v63  ;;  %689 = vmatpush2.msra.mxu0 %v446_v2  ;;  %v337_v63 = vld [vmem:[%s1280_s10 + $0x258] sm:$0xff]  ;;  %v392_v2 = vunpack.c.l.bf16 %v267_v56  ;;  %v311_v56 = vld [vmem:[%s1280_s10 + $0x188] sm:$0xff] }
  0x74   : > { %690 = vmatprep.mubr.f32.mxu0 %v1368_v4  ;;  %775 = vmatpush1.msra.mxu1 %v432_v3  ;;  %v536_v3 = vunpack.c.l.bf16 %v339_v57  ;;  %v313_v50 = vld [vmem:[%s1280_s10 + $0x198] sm:$0xff]  ;;  %v375_v57 = vld [vmem:[%s1280_s10 + $0x388] sm:$0xff] }
  0x75   : > { %691 = vmatmul.mubr.f32.vlgmr.msra.gmra.mxu0 %v1375_v7  ;;  %776 = vmatprep.subr.mxu1 %v429_v8  ;;  %v389_v8 = vunpack.c.h.bf16 %v265_v62 }
  0x76   : > { %839 = vmatprep.subr.mxu0 %v573_v9  ;;  %777 = vmatpush1.msra.mxu1 %v428_v10  ;;  %v533_v9 = vunpack.c.h.bf16 %v337_v63  ;;  %v388_v10 = vunpack.c.l.bf16 %v265_v62  ;;  %v309_v62 = vld [vmem:[%s1280_s10 + $0x178] sm:$0xff] }
  0x77   : > { %840 = vmatpush1.msra.mxu0 %v572_v11  ;;  %778 = vmatprep.subr.mxu1 %v425_v14  ;;  %v532_v11 = vunpack.c.l.bf16 %v337_v63  ;;  %v385_v14 = vunpack.c.h.bf16 %v263_v5  ;;  %v373_v63 = vld [vmem:[%s1280_s10 + $0x378] sm:$0xff] }
  0x78   : > { %841 = vmatprep.subr.mxu0 %v569_v15  ;;  %779 = vmatpush1.msra.mxu1 %v424_v16  ;;  %v529_v15 = vunpack.c.h.bf16 %v335_v6  ;;  %v384_v16 = vunpack.c.l.bf16 %v263_v5  ;;  %v307_v5 = vld [vmem:[%s1280_s10 + $0x168] sm:$0xff] }
  0x79   : > { %842 = vmatpush1.msra.mxu0 %v568_v17  ;;  %780 = vmatprep.subr.mxu1 %v421_v20  ;;  %v528_v17 = vunpack.c.l.bf16 %v335_v6  ;;  %v509_v20 = vunpack.c.h.bf16 %v325_v12  ;;  %v371_v6 = vld [vmem:[%s1280_s10 + $0x368] sm:$0xff] }
  0x7a   : > { %843 = vmatprep.subr.mxu0 %v565_v21  ;;  %781 = vmatpush1.msra.mxu1 %v420_v22  ;;  %v525_v21 = vunpack.c.h.bf16 %v333_v13  ;;  %v508_v22 = vunpack.c.l.bf16 %v325_v12  ;;  %v305_v12 = vld [vmem:[%s1280_s10 + $0x158] sm:$0xff] }
  0x7b   : > { %844 = vmatpush1.msra.mxu0 %v564_v23  ;;  %782 = vmatprep.subr.mxu1 %v417_v26  ;;  %v524_v23 = vunpack.c.l.bf16 %v333_v13  ;;  %v505_v26 = vunpack.c.h.bf16 %v323_v18  ;;  %v369_v13 = vld [vmem:[%s1280_s10 + $0x358] sm:$0xff] }
  0x7c   : > { %845 = vmatprep.subr.mxu0 %v561_v27  ;;  %783 = vmatpush1.msra.mxu1 %v416_v28  ;;  %v521_v27 = vunpack.c.h.bf16 %v331_v19  ;;  %v504_v28 = vunpack.c.l.bf16 %v323_v18  ;;  %v303_v18 = vld [vmem:[%s1280_s10 + $0x148] sm:$0xff] }
  0x7d   : > { %846 = vmatpush1.msra.mxu0 %v560_v29  ;;  %784 = vmatprep.subr.mxu1 %v413_v32  ;;  %v520_v29 = vunpack.c.l.bf16 %v331_v19  ;;  %v501_v32 = vunpack.c.h.bf16 %v321_v24  ;;  %v367_v19 = vld [vmem:[%s1280_s10 + $0x348] sm:$0xff] }
  0x7e   : > { %847 = vmatprep.subr.mxu0 %v557_v33  ;;  %785 = vmatpush1.msra.mxu1 %v412_v34  ;;  %v517_v33 = vunpack.c.h.bf16 %v329_v25  ;;  %v500_v34 = vunpack.c.l.bf16 %v321_v24  ;;  %v301_v24 = vld [vmem:[%s1280_s10 + $0x138] sm:$0xff] }
  0x7f   : > { %848 = vmatpush1.msra.mxu0 %v556_v35  ;;  %786 = vmatprep.subr.mxu1 %v409_v38  ;;  %v516_v35 = vunpack.c.l.bf16 %v329_v25  ;;  %v497_v38 = vunpack.c.h.bf16 %v319_v30  ;;  %v365_v25 = vld [vmem:[%s1280_s10 + $0x338] sm:$0xff] }
  0x80   : > { %849 = vmatprep.subr.mxu0 %v553_v39  ;;  %787 = vmatpush1.msra.mxu1 %v408_v40  ;;  %v513_v39 = vunpack.c.h.bf16 %v327_v31  ;;  %v496_v40 = vunpack.c.l.bf16 %v319_v30  ;;  %v299_v30 = vld [vmem:[%s1280_s10 + $0x128] sm:$0xff] }
  0x81   : > { %850 = vmatpush1.msra.mxu0 %v552_v41  ;;  %788 = vmatprep.subr.mxu1 %v405_v44  ;;  %v512_v41 = vunpack.c.l.bf16 %v327_v31  ;;  %v493_v44 = vunpack.c.h.bf16 %v317_v36  ;;  %v363_v31 = vld [vmem:[%s1280_s10 + $0x328] sm:$0xff] }
  0x82   : > { %851 = vmatprep.subr.mxu0 %v549_v46  ;;  %789 = vmatpush1.msra.mxu1 %v404_v48  ;;  %v621_v46 = vunpack.c.h.bf16 %v381_v37  ;;  %v492_v48 = vunpack.c.l.bf16 %v317_v36  ;;  %v297_v36 = vld [vmem:[%s1280_s10 + $0x118] sm:$0xff] }
  0x83   : > { %852 = vmatpush1.msra.mxu0 %v548_v49  ;;  %790 = vmatprep.subr.mxu1 %v401_v52  ;;  %v620_v49 = vunpack.c.l.bf16 %v381_v37  ;;  %v489_v52 = vunpack.c.h.bf16 %v315_v42  ;;  %v361_v37 = vld [vmem:[%s1280_s10 + $0x318] sm:$0xff] }
  0x84   : > { %853 = vmatprep.subr.mxu0 %v545_v53  ;;  %791 = vmatpush1.msra.mxu1 %v400_v54  ;;  %v617_v53 = vunpack.c.h.bf16 %v379_v43  ;;  %v488_v54 = vunpack.c.l.bf16 %v315_v42  ;;  %v295_v42 = vld [vmem:[%s1280_s10 + $0x108] sm:$0xff] }
  0x85   : > { %854 = vmatpush1.msra.mxu0 %v544_v55  ;;  %792 = vmatprep.subr.mxu1 %v397_v58  ;;  %v616_v55 = vunpack.c.l.bf16 %v379_v43  ;;  %v485_v58 = vunpack.c.h.bf16 %v313_v50  ;;  %v359_v43 = vld [vmem:[%s1280_s10 + $0x308] sm:$0xff] }
  0x86   : > { %855 = vmatprep.subr.mxu0 %v541_v59  ;;  %793 = vmatpush1.msra.mxu1 %v396_v60  ;;  %v613_v59 = vunpack.c.h.bf16 %v377_v51  ;;  %v484_v60 = vunpack.c.l.bf16 %v313_v50  ;;  %v449_v50 = vunpack.c.h.bf16 %v295_v42 }
  0x87   : > { %856 = vmatpush1.msra.mxu0 %v540_v61  ;;  %794 = vmatprep.subr.mxu1 %v393_v0  ;;  %v612_v61 = vunpack.c.l.bf16 %v377_v51  ;;  %v481_v0 = vunpack.c.h.bf16 %v311_v56  ;;  %v577_v51 = vunpack.c.h.bf16 %v359_v43 }
  0x88   : > { %857 = vmatprep.subr.mxu0 %v537_v1  ;;  %795 = vmatpush1.msra.mxu1 %v392_v2  ;;  %v609_v1 = vunpack.c.h.bf16 %v375_v57  ;;  %v480_v2 = vunpack.c.l.bf16 %v311_v56 }
  0x89   : > { %858 = vmatpush1.msra.mxu0 %v536_v3  ;;  %796 = vmatprep.subr.mxu1 %v389_v8  ;;  %v608_v3 = vunpack.c.l.bf16 %v375_v57  ;;  %v477_v8 = vunpack.c.h.bf16 %v309_v62  ;;  %v936_v57 = vld [vmem:[%s250_s27] sm:$0xf] }
  0x8a   : > { %859 = vmatprep.subr.mxu0 %v533_v9  ;;  %797 = vmatpush1.msra.mxu1 %v388_v10  ;;  %v605_v9 = vunpack.c.h.bf16 %v373_v63  ;;  %v476_v10 = vunpack.c.l.bf16 %v309_v62 }
  0x8b   : > { %860 = vmatpush1.msra.mxu0 %v532_v11  ;;  %798 = vmatprep.subr.mxu1 %v385_v14  ;;  %v604_v11 = vunpack.c.l.bf16 %v373_v63  ;;  %v473_v14 = vunpack.c.h.bf16 %v307_v5 }
  0x8c   : > { %861 = vmatprep.subr.mxu0 %v529_v15  ;;  %799 = vmatpush1.msra.mxu1 %v384_v16  ;;  %v601_v15 = vunpack.c.h.bf16 %v371_v6  ;;  %v472_v16 = vunpack.c.l.bf16 %v307_v5 }
  0x8d   : > { %862 = vmatpush1.msra.mxu0 %v528_v17  ;;  %800 = vmatprep.subr.mxu1 %v509_v20  ;;  %v600_v17 = vunpack.c.l.bf16 %v371_v6  ;;  %v469_v20 = vunpack.c.h.bf16 %v305_v12 }
  0x8e   : > { %863 = vmatprep.subr.mxu0 %v525_v21  ;;  %801 = vmatpush2.msra.mxu1 %v508_v22  ;;  %v597_v21 = vunpack.c.h.bf16 %v369_v13  ;;  %v468_v22 = vunpack.c.l.bf16 %v305_v12 }
  0x8f   : > { %864 = vmatpush1.msra.mxu0 %v524_v23  ;;  %802 = vmatprep.subr.mxu1 %v505_v26  ;;  %v596_v23 = vunpack.c.l.bf16 %v369_v13  ;;  %v465_v26 = vunpack.c.h.bf16 %v303_v18 }
  0x90   : > { %865 = vmatprep.subr.mxu0 %v521_v27  ;;  %803 = vmatpush2.msra.mxu1 %v504_v28  ;;  %v593_v27 = vunpack.c.h.bf16 %v367_v19  ;;  %v464_v28 = vunpack.c.l.bf16 %v303_v18 }
  0x91   : > { %866 = vmatpush1.msra.mxu0 %v520_v29  ;;  %804 = vmatprep.subr.mxu1 %v501_v32  ;;  %v592_v29 = vunpack.c.l.bf16 %v367_v19  ;;  %v461_v32 = vunpack.c.h.bf16 %v301_v24 }
  0x92   : > { %867 = vmatprep.subr.mxu0 %v517_v33  ;;  %805 = vmatpush2.msra.mxu1 %v500_v34  ;;  %v589_v33 = vunpack.c.h.bf16 %v365_v25  ;;  %v460_v34 = vunpack.c.l.bf16 %v301_v24 }
  0x93   : > { %868 = vmatpush1.msra.mxu0 %v516_v35  ;;  %806 = vmatprep.subr.mxu1 %v497_v38  ;;  %v588_v35 = vunpack.c.l.bf16 %v365_v25  ;;  %v457_v38 = vunpack.c.h.bf16 %v299_v30 }
  0x94   : > { %869 = vmatprep.subr.mxu0 %v513_v39  ;;  %807 = vmatpush2.msra.mxu1 %v496_v40  ;;  %v585_v39 = vunpack.c.h.bf16 %v363_v31  ;;  %v456_v40 = vunpack.c.l.bf16 %v299_v30 }
  0x95   : > { %870 = vmatpush1.msra.mxu0 %v512_v41  ;;  %808 = vmatprep.subr.mxu1 %v493_v44  ;;  %v584_v41 = vunpack.c.l.bf16 %v363_v31  ;;  %v453_v44 = vunpack.c.h.bf16 %v297_v36 }
  0x96   : > { %879 = vmatprep.subr.mxu0 %v621_v46  ;;  %809 = vmatpush2.msra.mxu1 %v492_v48  ;;  %v581_v46 = vunpack.c.h.bf16 %v361_v37  ;;  %v452_v48 = vunpack.c.l.bf16 %v297_v36 }
  0x97   : > { %880 = vmatpush2.msra.mxu0 %v620_v49  ;;  %810 = vmatprep.subr.mxu1 %v489_v52  ;;  %v580_v49 = vunpack.c.l.bf16 %v361_v37  ;;  %v448_v52 = vunpack.c.l.bf16 %v295_v42 }
  0x98   : > { %881 = vmatprep.subr.mxu0 %v617_v53  ;;  %811 = vmatpush2.msra.mxu1 %v488_v54  ;;  %v576_v53 = vunpack.c.l.bf16 %v359_v43  ;;  %v912_v54 = vlaneseq }
  0x99   : > { %882 = vmatpush2.msra.mxu0 %v616_v55  ;;  %812 = vmatprep.subr.mxu1 %v485_v58 }
  0x9a   : > { %883 = vmatprep.subr.mxu0 %v613_v59  ;;  %813 = vmatpush2.msra.mxu1 %v484_v60  ;;  %v913_v55 = vshrl.u32 %v912_v54, 7 }
  0x9b   : > { %884 = vmatpush2.msra.mxu0 %v612_v61  ;;  %814 = vmatprep.subr.mxu1 %v481_v0 }
  0x9c   : > { %885 = vmatprep.subr.mxu0 %v609_v1  ;;  %815 = vmatpush2.msra.mxu1 %v480_v2  ;;  %v918_v56 = vsub.s32 1, %v913_v55 }
  0x9d   : > { %886 = vmatpush2.msra.mxu0 %v608_v3  ;;  %816 = vmatprep.subr.mxu1 %v477_v8  ;;  %v922_v8 = vsub.s32 2, %v913_v55 }
  0x9e   : > { %887 = vmatprep.subr.mxu0 %v605_v9  ;;  %817 = vmatpush2.msra.mxu1 %v476_v10  ;;  %v945_v2 = vrot.slane %v936_v57, %v918_v56  ;;  %v926_v9 = vsub.s32 3, %v913_v55 }
  0x9f   : > { %888 = vmatpush2.msra.mxu0 %v604_v11  ;;  %818 = vmatprep.subr.mxu1 %v473_v14  ;;  %v949_v14 = vrot.slane %v936_v57, %v922_v8 }
  0xa0   : > { %889 = vmatprep.subr.mxu0 %v601_v15  ;;  %819 = vmatpush2.msra.mxu1 %v472_v16 }
  0xa1   : > { %890 = vmatpush2.msra.mxu0 %v600_v17  ;;  %820 = vmatprep.subr.mxu1 %v469_v20  ;;  %v953_v20 = vrot.slane %v936_v57, %v926_v9 }
  0xa2   : > { %891 = vmatprep.subr.mxu0 %v597_v21  ;;  %821 = vmatpush2.msra.mxu1 %v468_v22 }
  0xa3   : > { %892 = vmatpush2.msra.mxu0 %v596_v23  ;;  %822 = vmatprep.subr.mxu1 %v465_v26 }
  0xa4   : > { %893 = vmatprep.subr.mxu0 %v593_v27  ;;  %823 = vmatpush2.msra.mxu1 %v464_v28 }
  0xa5   : > { %894 = vmatpush2.msra.mxu0 %v592_v29  ;;  %824 = vmatprep.subr.mxu1 %v461_v32 }
  0xa6   : > { %895 = vmatprep.subr.mxu0 %v589_v33  ;;  %825 = vmatpush2.msra.mxu1 %v460_v34 }
  0xa7   : > { %896 = vmatpush2.msra.mxu0 %v588_v35  ;;  %826 = vmatprep.subr.mxu1 %v457_v38 }
  0xa8   : > { %897 = vmatprep.subr.mxu0 %v585_v39  ;;  %827 = vmatpush2.msra.mxu1 %v456_v40 }
  0xa9   : > { %898 = vmatpush2.msra.mxu0 %v584_v41  ;;  %828 = vmatprep.subr.mxu1 %v453_v44 }
  0xaa   : > { %899 = vmatprep.subr.mxu0 %v581_v46  ;;  %829 = vmatpush2.msra.mxu1 %v452_v48 }
  0xab   : > { %900 = vmatpush2.msra.mxu0 %v580_v49  ;;  %830 = vmatprep.subr.mxu1 %v449_v50 }
  0xac   : > { %901 = vmatprep.subr.mxu0 %v577_v51  ;;  %831 = vmatpush2.msra.mxu1 %v448_v52 }
  0xad   : > { %832 = vmatprep.mubr.f32.mxu1 %v1368_v4  ;;  %902 = vmatpush2.msra.mxu0 %v576_v53  ;;  %v914_v4 = vsub.s32 0, %v913_v55 }
  0xae   : > { %1063 = vmatprep.mubr.msk.f32.mxu0 %vm622_vm0, %v1349_v45  ;;  %833 = vmatmul.mubr.f32.vlgmr.msra.gmra.mxu1 %v1375_v7  ;;  %v910_v45 = vld [vmem:[%s245_s22] sm:$0xf] }
  0xaf   : > { %904 = vmatmul.mubr.f32.vlgmr.msra.gmra.mxu0 %v1354_v47  ;;  %v915_v47 = vrot.slane %v910_v45, %v914_v4  ;;  %v941_v60 = vrot.slane %v936_v57, %v914_v4  ;;  %v919_v61 = vrot.slane %v910_v45, %v918_v56  ;;  %v923_v10 = vrot.slane %v910_v45, %v922_v8 }
  0xb0   : > { %v927_v15 = vrot.slane %v910_v45, %v926_v9 }
 0x12c   : > { %v763_v7 = vpop.f32.mrf.mxu1 }
 0x12e   : > { %v765_v62 = vpop.f32.mrf.mxu1 }
 0x135   : > { %v692_v58 = vpop.f32.mrf.mxu0 }
 0x136   : > { %v764_v59 = vadd.f32 %v763_v7, %v692_v58 }
 0x137   : > { %v694_v63 = vpop.f32.mrf.mxu0 }
 0x138   : > { %v932_v0 = vadd.f32 %v915_v47, %v764_v59  ;;  %v766_v1 = vadd.f32 %v765_v62, %v694_v63 }
 0x13a   : > { %v958_v3 = vmul.f32 %v941_v60, %v932_v0  ;;  %v933_v5 = vadd.f32 %v919_v61, %v766_v1 }
 0x13c   : > { %962 = vst [vmem:[%s256_s30] sm:$0xff] %v958_v3  ;;  %v959_v6 = vmul.f32 %v945_v2, %v933_v5 }
 0x13e   : > { %963 = vst [vmem:[%s256_s30 + $0x8] sm:$0xff] %v959_v6 }
 0x16e   : > { %v834_v11 = vpop.f32.mrf.mxu1 }
 0x16f   : > { %v905_v12 = vpop.f32.mrf.mxu0 }
 0x170   : > { %v906_v13 = vadd.f32 %v905_v12, %v834_v11  ;;  %v836_v16 = vpop.f32.mrf.mxu1 }
 0x171   : > { %v907_v17 = vpop.f32.mrf.mxu0 }
 0x172   : > { %v934_v18 = vadd.f32 %v923_v10, %v906_v13  ;;  %v908_v19 = vadd.f32 %v907_v17, %v836_v16 }
 0x174   : > { %v960_v21 = vmul.f32 %v949_v14, %v934_v18  ;;  %v935_v22 = vadd.f32 %v927_v15, %v908_v19 }
 0x176   : > { %964 = vst [vmem:[%s256_s30 + $0x10] sm:$0xff] %v960_v21  ;;  %v961_v23 = vmul.f32 %v953_v20, %v935_v22 }
 0x178   : > { %965 = vst [vmem:[%s256_s30 + $0x18] sm:$0xff] %v961_v23 }
 0x179 PF: > { %p14_p0 = scmp.ge.s32.totalorder %s1224_s20, 4   ;;  %s1469_s15 = smov %s1165_s16 }
 0x17a   : > { %s1470_s16 = smov %s1169_s17  ;;  %s1471_s17 = smov %s1234_s23 }
 0x17b   : > { %s1472_s18 = smov %s1224_s20  ;;  %16 = sbr.rel (!%p14_p0) target bundleno = 3 (0x3), region = 82 }
 0x180   :  { %988 = vsyncpa [#allocation3], 1 }
 0x181   :  { %990 = vsyncpa [#allocation3 + $0x1], 1 }

</bundles_post_ra>
